<compile_context>
chip_gen: v7x
topology: tpu7x:2x2x1
jax: 0.10.0
libtpu: 0.0.40
codegen_flags: <defaults>
</compile_context>

<pallas_src>
import functools

import jax
import jax.numpy as jnp
from jax.experimental import pallas as pl
from jax.experimental.pallas import tpu as pltpu


def _device_kind() -> str:
    try:
        return jax.devices()[0].device_kind.lower()
    except Exception:
        return ""


def _rmsnorm_kernel(x_ref, g_ref, o_ref, *, eps, inv_d, f32_out_path):
    # x_ref: (tile_rows, d_pad) block in VMEM; g_ref: (1, d_pad) gain.
    # NOTE: last grid block may be partial -> OOB rows hold stale data; safe
    # because everything here is per-row and their writes are dropped.
    x = x_ref[...]
    xf = x.astype(jnp.float32)
    ss = jnp.sum(xf * xf, axis=-1, keepdims=True)        # XLU lane reduction, f32 acc
    inv_rms = jax.lax.rsqrt(ss * inv_d + eps)            # EUP rsqrt; 1/d folded in
    if f32_out_path:
        g = g_ref[...].astype(jnp.float32)
        o_ref[...] = (xf * inv_rms * g).astype(o_ref.dtype)
    else:
        # bf16/fp16 output path (v6e/v7x have bf16 VALU): full-tile temps stay
        # in the input dtype -> half the VMEM footprint of the f32 path.
        o_ref[...] = (x * inv_rms.astype(x.dtype)
                      * g_ref[...].astype(x.dtype)).astype(o_ref.dtype)


def _vmem_bytes(tile_rows: int, d_pad: int, bpe: int, f32_out_path: bool) -> int:
    """Approximate scoped-VMEM footprint of one pipelined grid step."""
    blk = tile_rows * d_pad * bpe
    g_blk = d_pad * bpe
    buffered = 2 * (2 * blk + g_blk)                 # double-buffered in + out (+ g)
    f32_tile = tile_rows * d_pad * 4
    temps = (2 if f32_out_path else 1) * f32_tile + 4 * tile_rows * 4
    return buffered + temps


def _choose_tile_rows(rows: int, d_pad: int, bpe: int, row_align: int,
                      *, is_v7x: bool) -> int:
    """Row tile sized by block BYTES, aligned to dtype sublane packing, and
    split so v7x's two TensorCores both get work."""
    if rows <= row_align:
        return rows                                   # single full-extent block
    target_block_bytes = (6 << 20) if is_v7x else (4 << 20)
    row_bytes = d_pad * bpe
    t = max(1, target_block_bytes // row_bytes)
    t = max(row_align, (t // row_align) * row_align)
    num_cores = 2 if is_v7x else 1
    if num_cores > 1 and rows >= num_cores * row_align:
        per_core = max(row_align, (rows // num_cores // row_align) * row_align)
        t = min(t, per_core)                          # keep grid >= num_cores
    t = min(t, (rows // row_align) * row_align)
    return max(t, row_align)


def rmsnorm(x: jax.Array, g: jax.Array, eps: float = 1e-5,
            tile_rows: int | None = None) -> jax.Array:
    """RMSNorm over the last axis of x, scaled by g (shape (d_model,))."""
    orig_shape = x.shape
    d_model = orig_shape[-1]
    assert g.shape == (d_model,), "g must have shape (d_model,)"

    kind = _device_kind()
    is_v7x = "v7" in kind
    is_v5 = "v5" in kind
    bpe = jnp.dtype(x.dtype).itemsize
    row_align = max(8, 32 // bpe)            # 8 (f32), 16 (bf16), 32 (8-bit)

    # Lane-dense last axis: pad d_model to a multiple of 128 so stores stay
    # unmasked.  Zero-padded lanes contribute nothing to sum(x^2) and are
    # sliced off at the end; inv_d stays 1/d_model.
    d_pad = ((d_model + 127) // 128) * 128

    x2d = x.reshape(-1, d_model)
    rows = x2d.shape[0]
    g2d = g.reshape(1, d_model)
    if d_pad != d_model:
        x2d = jnp.pad(x2d, ((0, 0), (0, d_pad - d_model)))
        g2d = jnp.pad(g2d, ((0, 0), (0, d_pad - d_model)))

    # f32 multiply path for f32 inputs and on v5e (no bf16 VALU there).
    f32_out_path = (x.dtype == jnp.float32) or is_v5

    if tile_rows is None:
        tile_rows = _choose_tile_rows(rows, d_pad, bpe, row_align, is_v7x=is_v7x)
    tile_rows = min(tile_rows, rows)

    # Explicit VMEM accounting: shrink the tile if the footprint would blow the
    # device cap, then set the scoped limit from what we actually need.
    slack = 4 << 20
    cap = (52 << 20) if is_v7x else (96 << 20)
    while (tile_rows > row_align
           and _vmem_bytes(tile_rows, d_pad, bpe, f32_out_path) + slack > cap):
        tile_rows = max(row_align, ((tile_rows // 2) // row_align) * row_align)
    vmem_limit = int(min(cap, max(
        16 << 20, _vmem_bytes(tile_rows, d_pad, bpe, f32_out_path) + slack)))

    grid = (pl.cdiv(rows, tile_rows),)       # partial last block allowed, no row pad

    out = pl.pallas_call(
        functools.partial(_rmsnorm_kernel, eps=eps, inv_d=1.0 / d_model,
                          f32_out_path=f32_out_path),
        out_shape=jax.ShapeDtypeStruct((rows, d_pad), x.dtype),
        grid_spec=pltpu.PrefetchScalarGridSpec(
            num_scalar_prefetch=0,
            grid=grid,
            in_specs=[
                pl.BlockSpec((tile_rows, d_pad), lambda i: (i, 0)),
                pl.BlockSpec((1, d_pad), lambda i: (0, 0)),
            ],
            out_specs=pl.BlockSpec((tile_rows, d_pad), lambda i: (i, 0)),
        ),
        compiler_params=pltpu.CompilerParams(
            dimension_semantics=("parallel",),   # megacore shards the row axis
            vmem_limit_bytes=vmem_limit,
        ),
    )(x2d, g2d)

    if d_pad != d_model:
        out = out[:, :d_model]
    return out.reshape(orig_shape)


if __name__ == "__main__":
    key = jax.random.PRNGKey(0)
    batch, seq, d_model = 2, 8, 128

    def ref_rmsnorm(x, g, eps=1e-5):
        xf = x.astype(jnp.float32)
        rms = jnp.sqrt(jnp.mean(xf * xf, axis=-1, keepdims=True) + eps)
        return (xf / rms * g.astype(jnp.float32)).astype(x.dtype)

    k1, k2 = jax.random.split(key)

    # 1) f32, lane-aligned d_model (primary check, mirrors the PyTorch forward)
    x = jax.random.normal(k1, (batch, seq, d_model), dtype=jnp.float32)
    g = jnp.ones((d_model,), dtype=jnp.float32)   # nn.Parameter(torch.ones(d_model))
    out = rmsnorm(x, g, eps=1e-5)
    jax.block_until_ready(out)
    assert out.shape == x.shape
    assert jnp.allclose(out, ref_rmsnorm(x, g), atol=1e-5, rtol=1e-5), \
        "f32 mismatch vs reference"

    # 2) f32, d_model NOT a multiple of 128 (exercises the lane-padding path)
    d_odd = 96
    x_odd = jax.random.normal(k2, (batch, seq, d_odd), dtype=jnp.float32)
    g_odd = jnp.ones((d_odd,), dtype=jnp.float32)
    out_odd = rmsnorm(x_odd, g_odd, eps=1e-5)
    jax.block_until_ready(out_odd)
    assert jnp.allclose(out_odd, ref_rmsnorm(x_odd, g_odd),
                        atol=1e-5, rtol=1e-5), "padded-d_model mismatch"

    # 3) bf16 (low-precision output path on v6e/v7x; f32 path on v5e)
    x_bf = x.astype(jnp.bfloat16)
    g_bf = g.astype(jnp.bfloat16)
    out_bf = rmsnorm(x_bf, g_bf, eps=1e-5)
    jax.block_until_ready(out_bf)
    assert jnp.allclose(out_bf.astype(jnp.float32),
                        ref_rmsnorm(x_bf, g_bf).astype(jnp.float32),
                        atol=5e-2, rtol=5e-2), "bf16 mismatch"

    print("KERNEL_OK")
</pallas_src>

<mosaic_0001>
module attributes {stable_mosaic.version = 11 : i64} {
  func.func @_rmsnorm_kernel(%arg0: i32, %arg1: memref<16x128xf32, #tpu.memory_space<vmem>>, %arg2: memref<1x128xf32, #tpu.memory_space<vmem>>, %arg3: memref<16x128xf32, #tpu.memory_space<vmem>>) attributes {dimension_semantics = [#tpu.dimension_semantics<parallel>], iteration_bounds = array<i64: 1>, scalar_prefetch = 0 : i64, scratch_operands = 0 : i64, tpu.core_type = #tpu.core_type<tc>, window_params = [{transform_indices = @transform_0, window_bounds = array<i64: 16, 128>}, {pipeline_mode = #tpu.pipeline_mode<synchronous>, transform_indices = @transform_1, window_bounds = array<i64: 1, 128>}, {transform_indices = @transform_2, window_bounds = array<i64: 16, 128>}]} {
    %c0 = arith.constant 0 : index
    %c0_0 = arith.constant 0 : index
    %0 = vector.load %arg1[%c0, %c0_0] : memref<16x128xf32, #tpu.memory_space<vmem>>, vector<16x128xf32>
    %1 = arith.mulf %0, %0 : vector<16x128xf32>
    %cst = arith.constant dense<0.000000e+00> : vector<16xf32>
    %2 = vector.multi_reduction <add>, %1, %cst [1] : vector<16x128xf32> to vector<16xf32>
    %3 = vector.shape_cast %2 : vector<16xf32> to vector<16x1xf32>
    %cst_1 = arith.constant 7.812500e-03 : f32
    %4 = vector.broadcast %cst_1 : f32 to vector<16x1xf32>
    %5 = arith.mulf %3, %4 : vector<16x1xf32>
    %cst_2 = arith.constant 9.99999974E-6 : f32
    %6 = vector.broadcast %cst_2 : f32 to vector<16x1xf32>
    %7 = arith.addf %5, %6 : vector<16x1xf32>
    %8 = math.rsqrt %7 : vector<16x1xf32>
    %c0_3 = arith.constant 0 : index
    %c0_4 = arith.constant 0 : index
    %9 = vector.load %arg2[%c0_3, %c0_4] : memref<1x128xf32, #tpu.memory_space<vmem>>, vector<1x128xf32>
    %10 = vector.broadcast %8 : vector<16x1xf32> to vector<16x128xf32>
    %11 = arith.mulf %0, %10 : vector<16x128xf32>
    %12 = vector.broadcast %9 : vector<1x128xf32> to vector<16x128xf32>
    %13 = arith.mulf %11, %12 : vector<16x128xf32>
    %c0_5 = arith.constant 0 : index
    %c0_6 = arith.constant 0 : index
    %14 = vector.load %arg3[%c0_5, %c0_6] : memref<16x128xf32, #tpu.memory_space<vmem>>, vector<16x128xf32>
    tpu.vector_store %arg3[%c0_5, %c0_6], %13 {strides = array<i32>} : memref<16x128xf32, #tpu.memory_space<vmem>>, vector<16x128xf32>,
    return
  }
  func.func @transform_0(%arg0: i32) -> (i32, i32) {
    %c0_i32 = arith.constant 0 : i32
    %c0_i32_0 = arith.constant 0 : i32
    return %arg0, %c0_i32 : i32, i32
  }
  func.func @transform_1(%arg0: i32) -> (i32, i32) {
    %c0_i32 = arith.constant 0 : i32
    %c0_i32_0 = arith.constant 0 : i32
    %c0_i32_1 = arith.constant 0 : i32
    return %c0_i32, %c0_i32_0 : i32, i32
  }
  func.func @transform_2(%arg0: i32) -> (i32, i32) {
    %c0_i32 = arith.constant 0 : i32
    %c0_i32_0 = arith.constant 0 : i32
    return %arg0, %c0_i32 : i32, i32
  }
}

</mosaic_0001>

<bundles_post_ra>
// kernel: tpu_custom_call.1
= control target key start
LH: loop header
LB: loop body
LE: loop exit
PB: predicated region body
PF: predicated region fallthrough
CT: control target
= control target key end

     0   :  { %7 = vsyncpa [#allocation3], 0  ;;  %s179_s0 = inlined_call_operand.hbm [shape: f32[16,128], index: 0, kind: input, shape index: {}]   ;;  %s180_s1 = inlined_call_operand.vmem [shape: f32[1,128], index: 1, kind: input, shape index: {}]   ;;  %s181_s2 = inlined_call_operand.hbm [shape: f32[16,128], index: 2, kind: output, shape index: {}]  }
   0x1   :  { %8 = vsyncpa [#allocation4], 0  ;;  %s127_s9 = smov [#allocation2]   ;;  %s79_s13 = scalar_lea.hbm %s179_s0, 256 }
   0x2   :  { %s14_s10 = sshll.u32 %s127_s9, 4  ;;  %p80_p0 = scmp.ne.s32.totalorder %s179_s0, %s79_s13  ;;  %s15_s10 = int_to_ptr.vmem [resolvable:$true] %s14_s10 }
   0x3   :  { %p83_p1 = scmp.lt.u32.totalorder %s79_s13, %s179_s0 }
   0x5   :  { %p85_p2 = pnand %p83_p1, %p80_p0 }
   0x7   :  { %88 = shalt.err (!%p85_p2)
}
   0x8   :  { %s89_s18 = scalar_lea.vmem %s15_s10, 256  ;;  %p94_p4 = scmp.lt.s32.totalorder %s15_s10, %s15_s10 }
   0x9   :  { %p90_p3 = scmp.ne.s32.totalorder %s15_s10, %s89_s18  ;;  %p95_p5 = scmp.lt.s32.totalorder %s89_s18, %s89_s18 }
   0xb   :  { %p96_p6 = por %p95_p5, %p94_p4 }
   0xd   :  { %p97_p7 = pnand %p96_p6, %p90_p3 }
   0xf   :  { %100 = shalt.err (!%p97_p7)
}
  0x10   :  { %s128_s19 = smov 128   ;;  %s129_s20 = smov 8  }
  0x11   :  { %20 = dma.hbm_to_vmem [thread:$0]  %s179_s0, 256, %s15_s10, [#allocation3], %s128_s19, %s128_s19, %s129_s20  }
  0x12   :  { %123 = dma.done.wait [#allocation3], 256  }
  0x13   :  { %124 = vsyncadd [#allocation3], 4294967040  ;;  %v26_v0 = vld [vmem:[#allocation2] sm:$0xff]  ;;  %v27_v1 = vld [vmem:[#allocation2 + $0x8] sm:$0xff]  ;;  %s130_s0 = smov [#allocation5]  }
  0x14   :  { %v28_v2 = vmul.f32 %v26_v0, %v26_v0  ;;  %v29_v3 = vmul.f32 %v27_v1, %v27_v1  ;;  %v70_v11 = vld [vmem:[%s180_s1] ss:$0 sm:$0xff]  ;;  %s58_s25 = sshll.u32 %s130_s0, 4  ;;  %s59_s25 = int_to_ptr.vmem [resolvable:$true] %s58_s25 }
  0x15   :  { %s101_s26 = scalar_lea.vmem %s59_s25, 256  ;;  %p106_p9 = scmp.lt.s32.totalorder %s59_s25, %s59_s25 }
  0x16   :  { %30 = vadd.xlane.f32.xlu0 %v28_v2  ;;  %p102_p8 = scmp.ne.s32.totalorder %s59_s25, %s101_s26  ;;  %p107_p10 = scmp.lt.s32.totalorder %s101_s26, %s101_s26 }
  0x18   :  { %p108_p11 = por %p107_p10, %p106_p9 }
  0x1a   :  { %32 = vadd.xlane.f32.xlu0 %v29_v3  ;;  %p109_p12 = pnand %p108_p11, %p102_p8 }
  0xa3   :  { %v31_v4 = vpop.xlane.xlu0 %30 }
  0xa4   :  { %v34_v5 = vmul.f32 0.0078125, %v31_v4 }
  0xa6   :  { %v36_v6 = vadd.f32 1e-05, %v34_v5 }
  0xa7   :  { %v33_v7 = vpop.xlane.xlu0 %32 }
  0xa8   :  { %75 = vrsqrt.f32 %v36_v6  ;;  %v35_v8 = vmul.f32 0.0078125, %v33_v7 }
  0xaa   :  { %v37_v9 = vadd.f32 1e-05, %v35_v8 }
  0xac   :  { %77 = vrsqrt.f32 %v37_v9 }
  0xb2   :  { %v76_v10 = vpop.eup %75 }
  0xb3   :  { %v41_v12 = vmul.f32 %v76_v10, %v26_v0 }
  0xb5   :  { %v49_v13 = vmul.f32 %v70_v11, %v41_v12 }
  0xb6   :  { %v78_v14 = vpop.eup %77 }
  0xb7   :  { %v42_v15 = vmul.f32 %v78_v14, %v27_v1  ;;  %51 = vst [vmem:[#allocation5] sm:$0xff] %v49_v13 }
  0xb9   :  { %v50_v16 = vmul.f32 %v70_v11, %v42_v15 }
  0xbb   :  { %52 = vst [vmem:[#allocation5 + $0x8] sm:$0xff] %v50_v16 }
  0xbc   :  { %112 = shalt.err (!%p109_p12)
}
  0xbd   :  { %s113_s1 = scalar_lea.hbm %s181_s2, 256 }
  0xbe   :  { %p114_p13 = scmp.ne.s32.totalorder %s181_s2, %s113_s1  ;;  %p117_p0 = scmp.lt.u32.totalorder %s113_s1, %s181_s2 }
  0xc0   :  { %p119_p1 = pnand %p117_p0, %p114_p13 }
  0xc2   :  { %122 = shalt.err (!%p119_p1)
}
  0xc3   :  { %64 = dma.vmem_to_hbm [thread:$0]  %s59_s25, 256, %s181_s2, [#allocation4], %s128_s19, %s128_s19, %s129_s20  }
  0xc4   :  { %125 = dma.done.wait [#allocation4], 256  }
  0xc5   :  { %126 = vsyncadd [#allocation4], 4294967040 }
  0xc6   :  { %68 = vsyncpa [#allocation3], 1 }
  0xc7   :  { %69 = vsyncpa [#allocation4], 1 }

</bundles_post_ra>
